<compile_context>
chip_gen: v7x
topology: tpu7x:2x2x1
jax: 0.10.0
libtpu: 0.0.40
codegen_flags: <defaults>
</compile_context>

<pallas_src>
import jax
import jax.numpy as jnp
import numpy as np
from jax.experimental import pallas as pl
from jax.experimental.pallas import tpu as pltpu


def _round_up(x, m):
    return (x + m - 1) // m * m


# --------------------------------------------------------------------------
# Kernel
# --------------------------------------------------------------------------
def _make_kernel(num_layers):
    """Fused packed-MLP chain: P @ W0 + b0 -> relu -> @ W1 + b1 -> ... -> out."""

    def kernel(p_ref, *refs):
        out_ref = refs[-1]
        wb = refs[:-1]  # alternating (weight, bias) refs, all resident in VMEM

        # Layer 0 (im2col'd lag conv): bf16 operands, f32 accumulation.
        h = jnp.dot(p_ref[...], wb[0][...], preferred_element_type=jnp.float32)
        h = h + wb[1][...]

        # Subsequent 1x1-conv layers (block-diagonal packed), ReLU in between.
        for l in range(1, num_layers):
            a = jnp.maximum(h, 0.0).astype(jnp.bfloat16)
            h = jnp.dot(a, wb[2 * l][...], preferred_element_type=jnp.float32)
            h = h + wb[2 * l + 1][...]

        out_ref[...] = h.astype(out_ref.dtype)

    return kernel


# --------------------------------------------------------------------------
# Weight packing (done once, on host)
# --------------------------------------------------------------------------
def pack_cmlp_params(net_params, num_series, lag, hidden):
    """Pack per-network Conv1d weights into fused matmul operands.

    net_params: list (length p) of dicts {'w': [...], 'b': [...]} where
      w[0] has shape (hidden[0], p, lag)  (Conv1d(num_series, hidden[0], lag))
      w[l] has shape (d_out, d_in)        (Conv1d(d_in, d_out, 1), kernel squeezed)
    Returns list of (W_packed bf16, b_packed f32) per layer.
    """
    p = num_series
    K = p * lag
    K_pad = _round_up(K, 128)
    n_layers = len(hidden) + 1
    in_dims = [K] + list(hidden)
    out_dims = list(hidden) + [1]

    packed = []
    for l in range(n_layers):
        d_in, d_out = in_dims[l], out_dims[l]
        N_in = K_pad if l == 0 else _round_up(p * d_in, 128)
        N_out = _round_up(p, 128) if l == n_layers - 1 else _round_up(p * d_out, 128)
        W = np.zeros((N_in, N_out), np.float32)
        b = np.zeros((1, N_out), np.float32)
        for n in range(p):
            w_n = np.asarray(net_params[n]["w"][l], np.float32)
            b_n = np.asarray(net_params[n]["b"][l], np.float32)
            if l == 0:
                # (h0, p, lag) -> (h0, p*lag) with (channel, lag) flattening
                w_flat = w_n.reshape(d_out, K)
                W[:K, n * d_out:(n + 1) * d_out] = w_flat.T
                b[0, n * d_out:(n + 1) * d_out] = b_n
            elif l == n_layers - 1:
                W[n * d_in:(n + 1) * d_in, n] = w_n.reshape(d_in)
                b[0, n] = b_n.reshape(())
            else:
                W[n * d_in:(n + 1) * d_in, n * d_out:(n + 1) * d_out] = w_n.T
                b[0, n * d_out:(n + 1) * d_out] = b_n
        packed.append((jnp.asarray(W, jnp.bfloat16), jnp.asarray(b, jnp.float32)))
    return packed


# --------------------------------------------------------------------------
# Wrapper
# --------------------------------------------------------------------------
def _im2col(X, lag):
    """X: (B, T, p) -> P: (B*(T-lag+1), p*lag), flattened in (channel, lag) order."""
    B, T, p = X.shape
    T_out = T - lag + 1
    idx = jnp.arange(T_out)[:, None] + jnp.arange(lag)[None, :]  # (T_out, lag)
    patches = X[:, idx, :]                                       # (B, T_out, lag, p)
    patches = jnp.transpose(patches, (0, 1, 3, 2))               # (B, T_out, p, lag)
    return patches.reshape(B * T_out, p * lag)


def cmlp_forward(X, packed, lag, num_series, tile_m=512):
    """cMLP forward: X (batch, T, p) f32 -> (batch, T-lag+1, p) f32."""
    B, T, p = X.shape
    assert p == num_series
    T_out = T - lag + 1
    M = B * T_out
    K = p * lag
    K_pad = packed[0][0].shape[0]
    P_out_pad = packed[-1][0].shape[1]

    # im2col + pad: M -> multiple of tile_m (tile_m itself a multiple of 16 for
    # bf16 sublane packing), K -> K_pad multiple of 128.
    tile_m = min(tile_m, _round_up(M, 16))
    M_pad = _round_up(M, tile_m)
    P = _im2col(X, lag)
    P = jnp.pad(P, ((0, M_pad - M), (0, K_pad - K))).astype(jnp.bfloat16)

    num_layers = len(packed)
    kernel = _make_kernel(num_layers)

    # P tile depends only on the M-tile index; packed weights/biases use a
    # constant block index so they are DMA'd once and stay VMEM-resident.
    in_specs = [pl.BlockSpec((tile_m, K_pad), lambda i: (i, 0))]
    flat_args = [P]
    for W, b in packed:
        in_specs.append(pl.BlockSpec(W.shape, lambda i: (0, 0)))
        in_specs.append(pl.BlockSpec(b.shape, lambda i: (0, 0)))
        flat_args.extend([W, b])

    out = pl.pallas_call(
        kernel,
        out_shape=jax.ShapeDtypeStruct((M_pad, P_out_pad), jnp.float32),
        grid_spec=pltpu.PrefetchScalarGridSpec(
            num_scalar_prefetch=0,
            grid=(M_pad // tile_m,),
            in_specs=in_specs,
            out_specs=pl.BlockSpec((tile_m, P_out_pad), lambda i: (i, 0)),
        ),
        compiler_params=pltpu.CompilerParams(
            dimension_semantics=("parallel",),
        ),
    )(*flat_args)

    # Strip padding, reshape to (batch, T-lag+1, p) == torch.cat(..., dim=2).
    return out[:M, :p].reshape(B, T_out, p)


# --------------------------------------------------------------------------
# Pure-JAX reference (emulates the PyTorch module, per-network loop).
# --------------------------------------------------------------------------
def cmlp_reference(X, net_params, lag, hidden, quantize_bf16=True):
    B, T, p = X.shape
    T_out = T - lag + 1
    K = p * lag
    q = (lambda a: a.astype(jnp.bfloat16).astype(jnp.float32)) if quantize_bf16 else (lambda a: a)
    P = q(_im2col(X, lag))  # (M, K)
    outs = []
    for n in range(p):
        w0 = q(jnp.asarray(net_params[n]["w"][0], jnp.float32).reshape(hidden[0], K))
        b0 = jnp.asarray(net_params[n]["b"][0], jnp.float32)
        h = P @ w0.T + b0[None, :]
        for l in range(1, len(hidden) + 1):
            wl = q(jnp.asarray(net_params[n]["w"][l], jnp.float32))
            bl = jnp.asarray(net_params[n]["b"][l], jnp.float32)
            h = jnp.maximum(h, 0.0) @ wl.T + bl[None, :]
        outs.append(h)  # (M, 1)
    return jnp.concatenate(outs, axis=1).reshape(B, T_out, p)


# --------------------------------------------------------------------------
# Demo / self-test
# --------------------------------------------------------------------------
if __name__ == "__main__":
    key = jax.random.PRNGKey(0)

    batch, T, p, lag = 2, 16, 8, 4
    hidden = [32, 16]

    key, k_x = jax.random.split(key)
    X = jax.random.normal(k_x, (batch, T, p), jnp.float32)

    # Random per-network parameters with PyTorch Conv1d-style shapes.
    net_params = []
    dims_in = [p * lag] + hidden
    dims_out = hidden + [1]
    for n in range(p):
        ws, bs = [], []
        for l, (d_in, d_out) in enumerate(zip(dims_in, dims_out)):
            key, kw, kb = jax.random.split(key, 3)
            scale = 1.0 / np.sqrt(d_in)
            if l == 0:
                w = jax.random.uniform(kw, (d_out, p, lag), jnp.float32, -scale, scale)
            else:
                w = jax.random.uniform(kw, (d_out, d_in), jnp.float32, -scale, scale)
            b = jax.random.uniform(kb, (d_out,), jnp.float32, -scale, scale)
            ws.append(w)
            bs.append(b)
        net_params.append({"w": ws, "b": bs})

    packed = pack_cmlp_params(net_params, p, lag, hidden)

    out = cmlp_forward(X, packed, lag, p, tile_m=512)
    out = jax.block_until_ready(out)

    ref = jax.block_until_ready(cmlp_reference(X, net_params, lag, hidden, quantize_bf16=True))

    assert out.shape == (batch, T - lag + 1, p), out.shape
    if not np.allclose(np.asarray(out), np.asarray(ref), rtol=1e-3, atol=1e-3):
        max_err = float(jnp.max(jnp.abs(out - ref)))
        raise AssertionError(f"kernel mismatch vs reference, max abs err = {max_err}")

    print("KERNEL_OK")
</pallas_src>

<mosaic_0001>
module attributes {stable_mosaic.version = 11 : i64} {
  func.func @kernel(%arg0: i32, %arg1: memref<32x128xbf16, #tpu.memory_space<vmem>>, %arg2: memref<128x256xbf16, #tpu.memory_space<vmem>>, %arg3: memref<1x256xf32, #tpu.memory_space<vmem>>, %arg4: memref<256x128xbf16, #tpu.memory_space<vmem>>, %arg5: memref<1x128xf32, #tpu.memory_space<vmem>>, %arg6: memref<128x128xbf16, #tpu.memory_space<vmem>>, %arg7: memref<1x128xf32, #tpu.memory_space<vmem>>, %arg8: memref<32x128xf32, #tpu.memory_space<vmem>>) attributes {dimension_semantics = [#tpu.dimension_semantics<parallel>], iteration_bounds = array<i64: 1>, scalar_prefetch = 0 : i64, scratch_operands = 0 : i64, tpu.core_type = #tpu.core_type<tc>, window_params = [{transform_indices = @transform_0, window_bounds = array<i64: 32, 128>}, {pipeline_mode = #tpu.pipeline_mode<synchronous>, transform_indices = @transform_1, window_bounds = array<i64: 128, 256>}, {pipeline_mode = #tpu.pipeline_mode<synchronous>, transform_indices = @transform_2, window_bounds = array<i64: 1, 256>}, {pipeline_mode = #tpu.pipeline_mode<synchronous>, transform_indices = @transform_3, window_bounds = array<i64: 256, 128>}, {pipeline_mode = #tpu.pipeline_mode<synchronous>, transform_indices = @transform_4, window_bounds = array<i64: 1, 128>}, {pipeline_mode = #tpu.pipeline_mode<synchronous>, transform_indices = @transform_5, window_bounds = array<i64: 128, 128>}, {pipeline_mode = #tpu.pipeline_mode<synchronous>, transform_indices = @transform_6, window_bounds = array<i64: 1, 128>}, {transform_indices = @transform_7, window_bounds = array<i64: 32, 128>}]} {
    %c0 = arith.constant 0 : index
    %c0_0 = arith.constant 0 : index
    %0 = vector.load %arg1[%c0, %c0_0] : memref<32x128xbf16, #tpu.memory_space<vmem>>, vector<32x128xbf16>
    %c0_1 = arith.constant 0 : index
    %c0_2 = arith.constant 0 : index
    %1 = vector.load %arg2[%c0_1, %c0_2] : memref<128x256xbf16, #tpu.memory_space<vmem>>, vector<128x256xbf16>
    %cst = arith.constant dense<0.000000e+00> : vector<32x256xf32>
    %2 = tpu.matmul %0, %1, %cst {dimension_numbers = #tpu.dot_dimension_numbers<[1], [0], [0], [1], [0, 0, 1, 1], [], []>} : vector<32x128xbf16>, vector<128x256xbf16>, vector<32x256xf32> -> vector<32x256xf32>
    %c0_3 = arith.constant 0 : index
    %c0_4 = arith.constant 0 : index
    %3 = vector.load %arg3[%c0_3, %c0_4] : memref<1x256xf32, #tpu.memory_space<vmem>>, vector<1x256xf32>
    %4 = vector.broadcast %3 : vector<1x256xf32> to vector<32x256xf32>
    %5 = arith.addf %2, %4 : vector<32x256xf32>
    %cst_5 = arith.constant 0.000000e+00 : f32
    %6 = vector.broadcast %cst_5 : f32 to vector<32x256xf32>
    %7 = arith.maximumf %5, %6 : vector<32x256xf32>
    %8 = arith.truncf %7 : vector<32x256xf32> to vector<32x256xbf16>
    %c0_6 = arith.constant 0 : index
    %c0_7 = arith.constant 0 : index
    %9 = vector.load %arg4[%c0_6, %c0_7] : memref<256x128xbf16, #tpu.memory_space<vmem>>, vector<256x128xbf16>
    %cst_8 = arith.constant dense<0.000000e+00> : vector<32x128xf32>
    %10 = tpu.matmul %8, %9, %cst_8 {dimension_numbers = #tpu.dot_dimension_numbers<[1], [0], [0], [1], [0, 0, 1, 1], [], []>} : vector<32x256xbf16>, vector<256x128xbf16>, vector<32x128xf32> -> vector<32x128xf32>
    %c0_9 = arith.constant 0 : index
    %c0_10 = arith.constant 0 : index
    %11 = vector.load %arg5[%c0_9, %c0_10] : memref<1x128xf32, #tpu.memory_space<vmem>>, vector<1x128xf32>
    %12 = vector.broadcast %11 : vector<1x128xf32> to vector<32x128xf32>
    %13 = arith.addf %10, %12 : vector<32x128xf32>
    %cst_11 = arith.constant 0.000000e+00 : f32
    %14 = vector.broadcast %cst_11 : f32 to vector<32x128xf32>
    %15 = arith.maximumf %13, %14 : vector<32x128xf32>
    %16 = arith.truncf %15 : vector<32x128xf32> to vector<32x128xbf16>
    %c0_12 = arith.constant 0 : index
    %c0_13 = arith.constant 0 : index
    %17 = vector.load %arg6[%c0_12, %c0_13] : memref<128x128xbf16, #tpu.memory_space<vmem>>, vector<128x128xbf16>
    %cst_14 = arith.constant dense<0.000000e+00> : vector<32x128xf32>
    %18 = tpu.matmul %16, %17, %cst_14 {dimension_numbers = #tpu.dot_dimension_numbers<[1], [0], [0], [1], [0, 0, 1, 1], [], []>} : vector<32x128xbf16>, vector<128x128xbf16>, vector<32x128xf32> -> vector<32x128xf32>
    %c0_15 = arith.constant 0 : index
    %c0_16 = arith.constant 0 : index
    %19 = vector.load %arg7[%c0_15, %c0_16] : memref<1x128xf32, #tpu.memory_space<vmem>>, vector<1x128xf32>
    %20 = vector.broadcast %19 : vector<1x128xf32> to vector<32x128xf32>
    %21 = arith.addf %18, %20 : vector<32x128xf32>
    %c0_17 = arith.constant 0 : index
    %c0_18 = arith.constant 0 : index
    %22 = vector.load %arg8[%c0_17, %c0_18] : memref<32x128xf32, #tpu.memory_space<vmem>>, vector<32x128xf32>
    tpu.vector_store %arg8[%c0_17, %c0_18], %21 {strides = array<i32>} : memref<32x128xf32, #tpu.memory_space<vmem>>, vector<32x128xf32>,
    return
  }
  func.func @transform_0(%arg0: i32) -> (i32, i32) {
    %c0_i32 = arith.constant 0 : i32
    %c0_i32_0 = arith.constant 0 : i32
    return %arg0, %c0_i32 : i32, i32
  }
  func.func @transform_1(%arg0: i32) -> (i32, i32) {
    %c0_i32 = arith.constant 0 : i32
    %c0_i32_0 = arith.constant 0 : i32
    %c0_i32_1 = arith.constant 0 : i32
    return %c0_i32, %c0_i32_0 : i32, i32
  }
  func.func @transform_2(%arg0: i32) -> (i32, i32) {
    %c0_i32 = arith.constant 0 : i32
    %c0_i32_0 = arith.constant 0 : i32
    %c0_i32_1 = arith.constant 0 : i32
    return %c0_i32, %c0_i32_0 : i32, i32
  }
  func.func @transform_3(%arg0: i32) -> (i32, i32) {
    %c0_i32 = arith.constant 0 : i32
    %c0_i32_0 = arith.constant 0 : i32
    %c0_i32_1 = arith.constant 0 : i32
    return %c0_i32, %c0_i32_0 : i32, i32
  }
  func.func @transform_4(%arg0: i32) -> (i32, i32) {
    %c0_i32 = arith.constant 0 : i32
    %c0_i32_0 = arith.constant 0 : i32
    %c0_i32_1 = arith.constant 0 : i32
    return %c0_i32, %c0_i32_0 : i32, i32
  }
  func.func @transform_5(%arg0: i32) -> (i32, i32) {
    %c0_i32 = arith.constant 0 : i32
    %c0_i32_0 = arith.constant 0 : i32
    %c0_i32_1 = arith.constant 0 : i32
    return %c0_i32, %c0_i32_0 : i32, i32
  }
  func.func @transform_6(%arg0: i32) -> (i32, i32) {
    %c0_i32 = arith.constant 0 : i32
    %c0_i32_0 = arith.constant 0 : i32
    %c0_i32_1 = arith.constant 0 : i32
    return %c0_i32, %c0_i32_0 : i32, i32
  }
  func.func @transform_7(%arg0: i32) -> (i32, i32) {
    %c0_i32 = arith.constant 0 : i32
    %c0_i32_0 = arith.constant 0 : i32
    return %arg0, %c0_i32 : i32, i32
  }
}

</mosaic_0001>

<bundles_post_ra>
// kernel: tpu_custom_call.1
= control target key start
LH: loop header
LB: loop body
LE: loop exit
PB: predicated region body
PF: predicated region fallthrough
CT: control target
= control target key end

     0   :  { %12 = vsyncpa [#allocation3], 0  ;;  %s1026_s0 = inlined_call_operand.hbm [shape: bf16[32,128], index: 0, kind: input, shape index: {}]   ;;  %s1027_s1 = inlined_call_operand.hbm [shape: bf16[128,256], index: 1, kind: input, shape index: {}]   ;;  %s1028_s2 = inlined_call_operand.vmem [shape: f32[1,256], index: 2, kind: input, shape index: {}]   ;;  %s1029_s3 = inlined_call_operand.hbm [shape: bf16[256,128], index: 3, kind: input, shape index: {}]   ;;  %s1030_s4 = inlined_call_operand.vmem [shape: f32[1,128], index: 4, kind: input, shape index: {}]   ;;  %s1031_s5 = inlined_call_operand.hbm [shape: bf16[128,128], index: 5, kind: input, shape index: {}]   ;;  %s1032_s6 = inlined_call_operand.vmem [shape: f32[1,128], index: 6, kind: input, shape index: {}]   ;;  %s1033_s7 = inlined_call_operand.hbm [shape: f32[32,128], index: 7, kind: output, shape index: {}]  }
   0x1   :  { %13 = vsyncpa [#allocation6], 0 }
   0x2   :  { %14 = vsyncpa [#allocation9], 0 }
   0x3   :  { %15 = vsyncpa [#allocation4], 0  ;;  %s885_s24 = smov [#allocation5]   ;;  %s767_s28 = scalar_lea.hbm %s1027_s1, 2048 }
   0x4   :  { %s33_s25 = sshll.u32 %s885_s24, 4  ;;  %p768_p0 = scmp.ne.s32.totalorder %s1027_s1, %s767_s28  ;;  %s34_s25 = int_to_ptr.vmem [resolvable:$true] %s33_s25 }
   0x5   :  { %p771_p1 = scmp.lt.u32.totalorder %s767_s28, %s1027_s1 }
   0x7   :  { %p773_p2 = pnand %p771_p1, %p768_p0 }
   0x9   :  { %776 = shalt.err (!%p773_p2)
}
   0xa   :  { %s777_s10 = scalar_lea.vmem %s34_s25, 2048  ;;  %p782_p4 = scmp.lt.s32.totalorder %s34_s25, %s34_s25 }
   0xb   :  { %p778_p3 = scmp.ne.s32.totalorder %s34_s25, %s777_s10  ;;  %p783_p5 = scmp.lt.s32.totalorder %s777_s10, %s777_s10 }
   0xd   :  { %p784_p6 = por %p783_p5, %p782_p4 }
   0xf   :  { %p785_p7 = pnand %p784_p6, %p778_p3 }
  0x11   :  { %788 = shalt.err (!%p785_p7)
}
  0x12   :  { %s886_s11 = smov 128   ;;  %s887_s12 = smov 8  }
  0x13   :  { %39 = dma.hbm_to_vmem [thread:$0]  %s1027_s1, 2048, %s34_s25, [#allocation6], %s886_s11, %s886_s11, %s887_s12  }
  0x14   :  { %s888_s15 = smov [#allocation2]   ;;  %s789_s19 = scalar_lea.hbm %s1026_s0, 256 }
  0x15   :  { %s21_s16 = sshll.u32 %s888_s15, 4  ;;  %p790_p8 = scmp.ne.s32.totalorder %s1026_s0, %s789_s19  ;;  %s22_s16 = int_to_ptr.vmem [resolvable:$true] %s21_s16 }
  0x16   :  { %p793_p9 = scmp.lt.u32.totalorder %s789_s19, %s1026_s0 }
  0x18   :  { %p795_p10 = pnand %p793_p9, %p790_p8 }
  0x1a   :  { %798 = shalt.err (!%p795_p10)
}
  0x1b   :  { %s799_s24 = scalar_lea.vmem %s22_s16, 256  ;;  %p804_p12 = scmp.lt.s32.totalorder %s22_s16, %s22_s16 }
  0x1c   :  { %p800_p11 = scmp.ne.s32.totalorder %s22_s16, %s799_s24  ;;  %p805_p13 = scmp.lt.s32.totalorder %s799_s24, %s799_s24 }
  0x1e   :  { %p806_p0 = por %p805_p13, %p804_p12 }
  0x20   :  { %p807_p1 = pnand %p806_p0, %p800_p11 }
  0x22   :  { %810 = shalt.err (!%p807_p1)
}
  0x23   :  { %s889_s1 = smov 64   ;;  %s890_s25 = smov 4  }
  0x24   :  { %27 = dma.hbm_to_vmem [thread:$0]  %s1026_s0, 256, %s22_s16, [#allocation3], %s889_s1, %s889_s1, %s890_s25  }
  0x25   :  { %s891_s28 = smov [#allocation7]   ;;  %s892_s30 = smov [#allocation8]  }
  0x26   :  { %s47_s29 = sshll.u32 %s891_s28, 4  ;;  %s61_s8 = sshll.u32 %s892_s30, 4  ;;  %s48_s29 = int_to_ptr.vmem [resolvable:$true] %s47_s29  ;;  %s965_s8 = int_to_ptr.vmem [resolvable:$true] %s61_s8 }
  0x27   :  { %s811_s13 = scalar_lea.hbm %s1029_s3, 2048 }
  0x28   :  { %p812_p2 = scmp.ne.s32.totalorder %s1029_s3, %s811_s13  ;;  %p815_p3 = scmp.lt.u32.totalorder %s811_s13, %s1029_s3 }
  0x2a   :  { %p817_p4 = pnand %p815_p3, %p812_p2 }
  0x2c   :  { %820 = shalt.err (!%p817_p4)
}
  0x2d   :  { %s821_s0 = scalar_lea.vmem %s48_s29, 2048  ;;  %p826_p6 = scmp.lt.s32.totalorder %s48_s29, %s48_s29 }
  0x2e   :  { %p822_p5 = scmp.ne.s32.totalorder %s48_s29, %s821_s0  ;;  %p827_p7 = scmp.lt.s32.totalorder %s821_s0, %s821_s0 }
  0x30   :  { %p828_p8 = por %p827_p7, %p826_p6 }
  0x32   :  { %p829_p9 = pnand %p828_p8, %p822_p5 }
  0x34   :  { %832 = shalt.err (!%p829_p9)
}
  0x35   :  { %53 = dma.hbm_to_vmem [thread:$0]  %s1029_s3, 2048, %s48_s29, [#allocation6], %s889_s1, %s889_s1, %s890_s25  }
  0x36   :  { %s833_s22 = scalar_lea.hbm %s1031_s5, 1024 }
  0x37   :  { %p834_p10 = scmp.ne.s32.totalorder %s1031_s5, %s833_s22  ;;  %p837_p11 = scmp.lt.u32.totalorder %s833_s22, %s1031_s5 }
  0x39   :  { %p839_p12 = pnand %p837_p11, %p834_p10 }
  0x3b   :  { %842 = shalt.err (!%p839_p12)
}
  0x3c   :  { %s843_s28 = scalar_lea.vmem %s965_s8, 1024  ;;  %p848_p0 = scmp.lt.s32.totalorder %s965_s8, %s965_s8 }
  0x3d   :  { %p844_p13 = scmp.ne.s32.totalorder %s965_s8, %s843_s28  ;;  %p849_p1 = scmp.lt.s32.totalorder %s843_s28, %s843_s28 }
  0x3f   :  { %p850_p2 = por %p849_p1, %p848_p0 }
  0x41   :  { %p851_p3 = pnand %p850_p2, %p844_p13 }
  0x43   :  { %854 = shalt.err (!%p851_p3)
}
  0x44   :  { %67 = dma.hbm_to_vmem [thread:$0]  %s1031_s5, 1024, %s965_s8, [#allocation9], %s889_s1, %s889_s1, %s890_s25  }
  0x45   :  { %877 = dma.done.wait [#allocation3], 256  }
  0x46   :  { %878 = vsyncadd [#allocation3], 4294967040 }
  0x47   :  { %879 = dma.done.wait [#allocation6], 4096  }
  0x48   :  { %880 = vsyncadd [#allocation6], 4294963200 }
  0x49   :  { %881 = dma.done.wait [#allocation9], 1024  }
  0x4a   :  { %882 = vsyncadd [#allocation9], 4294966272  ;;  %v893_v0 = vmov 0   ;;  %v717_v1 = vld [vmem:[#allocation5 + $0x4] ss:$8 sps:$4 sm:$0xff]   ;;  %v747_v16 = vld [vmem:[#allocation7 + $0x50] sm:$0xff]   ;;  %v105_v38 = vlaneseq }
  0x4b   :  { %239 = vmatprep.mubr.bf16.mxu0 %v893_v0  ;;  %v719_v2 = vld [vmem:[#allocation5] ss:$8 sps:$4 sm:$0xff]   ;;  %207 = vmatprep.subr.bf16.mxu0 %v717_v1  ;;  %v720_v3 = vld [vmem:[#allocation5 + $0x14] ss:$8 sps:$4 sm:$0xff]   ;;  %v722_v4 = vld [vmem:[#allocation5 + $0x10] ss:$8 sps:$4 sm:$0xff]  }
  0x4c   :  { %208 = vmatpush1.bf16.msra.mxu0 %v719_v2  ;;  %v723_v5 = vld [vmem:[#allocation5 + $0x24] ss:$8 sps:$4 sm:$0xff]   ;;  %v725_v6 = vld [vmem:[#allocation5 + $0x20] ss:$8 sps:$4 sm:$0xff]   ;;  %v726_v7 = vld [vmem:[#allocation5 + $0x34] ss:$8 sps:$4 sm:$0xff]  }
  0x4d   :  { %209 = vmatprep.subr.bf16.mxu0 %v720_v3  ;;  %v728_v8 = vld [vmem:[#allocation5 + $0x30] ss:$8 sps:$4 sm:$0xff]   ;;  %v729_v9 = vld [vmem:[#allocation5 + $0x44] ss:$8 sps:$4 sm:$0xff]   ;;  %v731_v10 = vld [vmem:[#allocation5 + $0x40] ss:$8 sps:$4 sm:$0xff]  }
  0x4e   :  { %v743_v11 = vld [vmem:[#allocation7 + $0x40] sm:$0xff]   ;;  %v732_v12 = vld [vmem:[#allocation5 + $0x54] ss:$8 sps:$4 sm:$0xff]   ;;  %v745_v14 = vld [vmem:[#allocation7 + $0x48] sm:$0xff]   ;;  %v106_v39 = vshrl.u32 %v105_v38, 7  ;;  %s894_s8 = smov [#allocation10]  }
  0x4f   :  { %v744_v13 = vld [vmem:[#allocation7] sm:$0xff]   ;;  %649 = vmatprep.subr.bf16.mxu1 %v743_v11  ;;  %v746_v15 = vld [vmem:[#allocation7 + $0x8] sm:$0xff]   ;;  %v734_v17 = vld [vmem:[#allocation5 + $0x50] ss:$8 sps:$4 sm:$0xff]   ;;  %s591_s9 = sshll.u32 %s894_s8, 4  ;;  %s592_s9 = int_to_ptr.vmem [resolvable:$true] %s591_s9 }
  0x50   :  { %210 = vmatpush1.bf16.msra.mxu0 %v722_v4  ;;  %650 = vmatpush3.bf16.msra.mxu1 %v744_v13  ;;  %v735_v18 = vld [vmem:[#allocation5 + $0x64] ss:$8 sps:$4 sm:$0xff]   ;;  %v748_v19 = vld [vmem:[#allocation7 + $0x10] sm:$0xff]   ;;  %v737_v20 = vld [vmem:[#allocation5 + $0x60] ss:$8 sps:$4 sm:$0xff]   ;;  %v107_v40 = vsub.s32 0, %v106_v39  ;;  %p860_p5 = scmp.lt.s32.totalorder %s592_s9, %s592_s9 }
  0x51   :  { %211 = vmatprep.subr.bf16.mxu0 %v723_v5  ;;  %651 = vmatprep.subr.bf16.mxu1 %v745_v14  ;;  %v749_v21 = vld [vmem:[#allocation7 + $0x58] sm:$0xff]   ;;  %v751_v24 = vld [vmem:[#allocation7 + $0x60] sm:$0xff]   ;;  %v753_v27 = vld [vmem:[#allocation7 + $0x68] sm:$0xff]   ;;  %v111_v42 = vsub.s32 1, %v106_v39  ;;  %s855_s10 = scalar_lea.vmem %s592_s9, 512 }
  0x52   :  { %v738_v22 = vld [vmem:[#allocation5 + $0x74] ss:$8 sps:$4 sm:$0xff]   ;;  %v740_v25 = vld [vmem:[#allocation5 + $0x70] ss:$8 sps:$4 sm:$0xff]   ;;  %v752_v26 = vld [vmem:[#allocation7 + $0x20] sm:$0xff]   ;;  %p856_p4 = scmp.ne.s32.totalorder %s592_s9, %s855_s10  ;;  %p861_p6 = scmp.lt.s32.totalorder %s855_s10, %s855_s10 }
  0x53   :  { %v750_v23 = vld [vmem:[#allocation7 + $0x18] sm:$0xff]   ;;  %v741_v28 = vld [vmem:[#allocation2] sm:$0xff]   ;;  %v754_v30 = vld [vmem:[#allocation7 + $0x28] sm:$0xff]  }
  0x54   :  { %212 = vmatpush1.bf16.msra.mxu0 %v725_v6  ;;  %652 = vmatpush3.bf16.msra.mxu1 %v746_v15  ;;  %v742_v29 = vld [vmem:[#allocation2 + $0x8] sm:$0xff]   ;;  %v755_v31 = vld [vmem:[#allocation7 + $0x70] sm:$0xff]   ;;  %v759_v35 = vld [vmem:[#allocation8] sm:$0xff]   ;;  %p862_p7 = por %p861_p6, %p860_p5 }
  0x55   :  { %213 = vmatprep.subr.bf16.mxu0 %v726_v7  ;;  %653 = vmatprep.subr.bf16.mxu1 %v747_v16  ;;  %v756_v32 = vld [vmem:[#allocation7 + $0x30] sm:$0xff]   ;;  %v757_v33 = vld [vmem:[#allocation7 + $0x78] sm:$0xff]   ;;  %v760_v36 = vld [vmem:[#allocation8 + $0x8] sm:$0xff]  }
  0x56   :  { %v758_v34 = vld [vmem:[#allocation7 + $0x38] sm:$0xff]   ;;  %v761_v37 = vld [vmem:[#allocation8 + $0x10] sm:$0xff]   ;;  %v764_v11 = vld [vmem:[#allocation8 + $0x28] sm:$0xff]   ;;  %p863_p8 = pnand %p862_p7, %p856_p4 }
  0x57   :  { %v103_v41 = vld [vmem:[%s1028_s2] sm:$0x3]  ;;  %v766_v13 = vld [vmem:[#allocation8 + $0x38] sm:$0xff]  }
  0x58   :  { %214 = vmatpush1.bf16.msra.mxu0 %v728_v8  ;;  %654 = vmatpush3.bf16.msra.mxu1 %v748_v19  ;;  %v108_v43 = vrot.slane %v103_v41, %v107_v40  ;;  %v112_v44 = vrot.slane %v103_v41, %v111_v42  ;;  %v623_v15 = vld [vmem:[%s1030_s4] ss:$0 sm:$0xff] }
  0x59   :  { %215 = vmatprep.subr.bf16.mxu0 %v729_v9  ;;  %655 = vmatprep.subr.bf16.mxu1 %v749_v21  ;;  %v762_v9 = vld [vmem:[#allocation8 + $0x18] sm:$0xff]  }
  0x5c   :  { %216 = vmatpush1.bf16.msra.mxu0 %v731_v10  ;;  %656 = vmatpush3.bf16.msra.mxu1 %v750_v23  ;;  %v763_v10 = vld [vmem:[#allocation8 + $0x20] sm:$0xff]  }
  0x5d   :  { %217 = vmatprep.subr.bf16.mxu0 %v732_v12  ;;  %657 = vmatprep.subr.bf16.mxu1 %v751_v24  ;;  %v765_v12 = vld [vmem:[#allocation8 + $0x30] sm:$0xff]  }
  0x60   :  { %218 = vmatpush1.bf16.msra.mxu0 %v734_v17  ;;  %658 = vmatpush3.bf16.msra.mxu1 %v752_v26 }
  0x61   :  { %219 = vmatprep.subr.bf16.mxu0 %v735_v18  ;;  %659 = vmatprep.subr.bf16.mxu1 %v753_v27 }
  0x64   :  { %220 = vmatpush1.bf16.msra.mxu0 %v737_v20  ;;  %660 = vmatpush3.bf16.msra.mxu1 %v754_v30 }
  0x65   :  { %221 = vmatprep.subr.bf16.mxu0 %v738_v22  ;;  %661 = vmatprep.subr.bf16.mxu1 %v755_v31 }
  0x68   :  { %222 = vmatpush1.bf16.msra.mxu0 %v740_v25  ;;  %662 = vmatpush3.bf16.msra.mxu1 %v756_v32 }
  0x69   :  { %663 = vmatprep.subr.bf16.mxu1 %v757_v33  ;;  %687 = vmatprep.subr.bf16.mxu0 %v759_v35 }
  0x6b   :  { %240 = vmatmul.mubr.bf16.vlgmr.msra.gmra.mrb[0].mxu0 %v741_v28 }
  0x6c   :  { %249 = vmatprep.mubr.bf16.mxu0 %v893_v0  ;;  %664 = vmatpush3.bf16.msra.mxu1 %v758_v34 }
  0x6d   :  { %688 = vmatpush3.bf16.msra.mxu0 %v759_v35 }
  0x6e   :  { %689 = vmatprep.subr.bf16.mxu0 %v760_v36 }
  0x71   :  { %690 = vmatpush3.bf16.msra.mxu0 %v760_v36 }
  0x72   :  { %691 = vmatprep.subr.bf16.mxu0 %v761_v37 }
  0x73   :  { %250 = vmatmul.mubr.bf16.gmra.mrb[4].mxu0 %v742_v29 }
  0x75   :  { %692 = vmatpush3.bf16.msra.mxu0 %v761_v37  ;;  %v640_v37 = vld [vmem:[%s1032_s6] ss:$0 sm:$0xff] }
  0x76   :  { %693 = vmatprep.subr.bf16.mxu0 %v762_v9 }
  0x79   :  { %694 = vmatpush3.bf16.msra.mxu0 %v762_v9 }
  0x7a   :  { %695 = vmatprep.subr.bf16.mxu0 %v763_v10 }
  0x7d   :  { %696 = vmatpush3.bf16.msra.mxu0 %v763_v10 }
  0x7e   :  { %697 = vmatprep.subr.bf16.mxu0 %v764_v11 }
  0x81   :  { %698 = vmatpush3.bf16.msra.mxu0 %v764_v11 }
  0x82   :  { %699 = vmatprep.subr.bf16.mxu0 %v765_v12 }
  0x85   :  { %700 = vmatpush3.bf16.msra.mxu0 %v765_v12 }
  0x86   :  { %701 = vmatprep.subr.bf16.mxu0 %v766_v13 }
  0x89   :  { %702 = vmatpush3.bf16.msra.mxu0 %v766_v13 }
 0x13e   :  { %v241_v45 = vpop.f32.mrb[0].mxu0 }
 0x13f   :  { %v242_v46 = vadd.f32 %v241_v45, %v108_v43  ;;  %v243_v47 = vpop.f32.mrb[1].mxu0 }
 0x140   :  { %v244_v48 = vadd.f32 %v243_v47, %v112_v44  ;;  %v245_v49 = vpop.f32.mrb[2].mxu0 }
 0x141   :  { %v246_v50 = vadd.f32 %v245_v49, %v108_v43  ;;  %v247_v51 = vpop.f32.mrb[3].mxu0  ;;  %v260_v53 = vmax.f32 %v242_v46, 0.0 }
 0x142   :  { %v248_v52 = vadd.f32 %v247_v51, %v112_v44  ;;  %v261_v55 = vmax.f32 %v244_v48, 0.0 }
 0x143   :  { %v262_v54 = vmax.f32 %v246_v50, 0.0 }
 0x144   :  { %v263_v56 = vmax.f32 %v248_v52, 0.0 }
 0x145   :  { %v268_v57 = vpack.c.bf16 %v262_v54, %v260_v53 }
 0x146   :  { %v251_v58 = vpop.f32.mrb[4].mxu0  ;;  %v269_v59 = vpack.c.bf16 %v263_v56, %v261_v55 }
 0x147   :  { %v252_v60 = vadd.f32 %v251_v58, %v108_v43  ;;  %v253_v61 = vpop.f32.mrb[5].mxu0 }
 0x148   :  { %v254_v62 = vadd.f32 %v253_v61, %v112_v44  ;;  %v255_v63 = vpop.f32.mrb[6].mxu0  ;;  %439 = vmatprep.mubr.bf16.mxu1 %v269_v59 }
 0x149   :  { %v256_v0 = vadd.f32 %v255_v63, %v108_v43  ;;  %v257_v1 = vpop.f32.mrb[7].mxu0  ;;  %440 = vmatmul.mubr.bf16.vlgmr.msra.gmra.mrb[0].mxu1 %v268_v57  ;;  %v264_v3 = vmax.f32 %v252_v60, 0.0 }
 0x14a   :  { %v258_v2 = vadd.f32 %v257_v1, %v112_v44  ;;  %v265_v5 = vmax.f32 %v254_v62, 0.0 }
 0x14b   :  { %v266_v4 = vmax.f32 %v256_v0, 0.0 }
 0x14c   :  { %v267_v6 = vmax.f32 %v258_v2, 0.0 }
 0x14d   :  { %v270_v7 = vpack.c.bf16 %v266_v4, %v264_v3 }
 0x14e   :  { %v271_v8 = vpack.c.bf16 %v267_v6, %v265_v5 }
 0x150   :  { %447 = vmatprep.mubr.bf16.mxu1 %v271_v8 }
 0x151   :  { %448 = vmatmul.mubr.bf16.gmra.mrb[4].mxu1 %v270_v7 }
 0x21c   :  { %v665_v14 = vpop.f32.mrb[0].mxu1 }
 0x21d   :  { %v666_v16 = vpop.f32.mrb[1].mxu1 }
 0x21e   :  { %v667_v17 = vadd.f32 %v666_v16, %v665_v14  ;;  %v668_v18 = vpop.f32.mrb[2].mxu1 }
 0x21f   :  { %v669_v19 = vpop.f32.mrb[3].mxu1 }
 0x220   :  { %v442_v20 = vadd.f32 %v667_v17, %v623_v15  ;;  %v670_v21 = vadd.f32 %v669_v19, %v668_v18 }
 0x222   :  { %v445_v22 = vadd.f32 %v670_v21, %v623_v15  ;;  %v456_v23 = vmax.f32 %v442_v20, 0.0 }
 0x224   :  { %v457_v24 = vmax.f32 %v445_v22, 0.0  ;;  %v671_v25 = vpop.f32.mrb[4].mxu1 }
 0x225   :  { %v672_v26 = vpop.f32.mrb[5].mxu1 }
 0x226   :  { %v673_v27 = vadd.f32 %v672_v26, %v671_v25  ;;  %v674_v28 = vpop.f32.mrb[6].mxu1  ;;  %v460_v29 = vpack.c.bf16 %v457_v24, %v456_v23 }
 0x227   :  { %v675_v30 = vpop.f32.mrb[7].mxu1 }
 0x228   :  { %v450_v31 = vadd.f32 %v673_v27, %v623_v15  ;;  %v676_v32 = vadd.f32 %v675_v30, %v674_v28  ;;  %703 = vmatprep.mubr.bf16.mxu0 %v460_v29 }
 0x22a   :  { %v453_v33 = vadd.f32 %v676_v32, %v623_v15  ;;  %v458_v34 = vmax.f32 %v450_v31, 0.0 }
 0x22c   :  { %v459_v35 = vmax.f32 %v453_v33, 0.0 }
 0x22e   :  { %v461_v36 = vpack.c.bf16 %v459_v35, %v458_v34 }
 0x230   :  { %704 = vmatmul.mubr.bf16.vlgmr.msra.gmra.mrb[8].mxu0 %v461_v36 }
 0x303   :  { %v705_v38 = vpop.f32.mrb[8].mxu0 }
 0x304   :  { %v576_v39 = vadd.f32 %v705_v38, %v640_v37  ;;  %v567_v40 = vpop.f32.mrb[9].mxu0 }
 0x305   :  { %v568_v41 = vadd.f32 %v640_v37, %v567_v40  ;;  %v706_v42 = vpop.f32.mrb[10].mxu0 }
 0x306   :  { %584 = vst [vmem:[#allocation10 + $0x10] sm:$0xff] %v576_v39  ;;  %v579_v43 = vadd.f32 %v706_v42, %v640_v37  ;;  %v570_v44 = vpop.f32.mrb[11].mxu0 }
 0x307   :  { %582 = vst [vmem:[#allocation10] sm:$0xff] %v568_v41  ;;  %v571_v45 = vadd.f32 %v640_v37, %v570_v44 }
 0x308   :  { %585 = vst [vmem:[#allocation10 + $0x18] sm:$0xff] %v579_v43 }
 0x309   :  { %583 = vst [vmem:[#allocation10 + $0x8] sm:$0xff] %v571_v45 }
 0x30a   :  { %866 = shalt.err (!%p863_p8)
}
 0x30b   :  { %s867_s14 = scalar_lea.hbm %s1033_s7, 512 }
 0x30c   :  { %p868_p9 = scmp.ne.s32.totalorder %s1033_s7, %s867_s14  ;;  %p871_p10 = scmp.lt.u32.totalorder %s867_s14, %s1033_s7 }
 0x30e   :  { %p873_p11 = pnand %p871_p10, %p868_p9 }
 0x310   :  { %876 = shalt.err (!%p873_p11)
}
 0x311   :  { %597 = dma.vmem_to_hbm [thread:$0]  %s592_s9, 512, %s1033_s7, [#allocation4], %s886_s11, %s886_s11, %s887_s12  }
 0x312   :  { %883 = dma.done.wait [#allocation4], 512  }
 0x313   :  { %884 = vsyncadd [#allocation4], 4294966784 }
 0x314   :  { %601 = vsyncpa [#allocation3], 1 }
 0x315   :  { %602 = vsyncpa [#allocation6], 1 }
 0x316   :  { %603 = vsyncpa [#allocation9], 1 }
 0x317   :  { %604 = vsyncpa [#allocation4], 1 }

</bundles_post_ra>
